<compile_context>
chip_gen: v5e
topology: v5e:2x2
jax: 0.10.0
libtpu: 0.0.40
codegen_flags: <defaults>
</compile_context>

<pallas_src>
import jax
import jax.numpy as jnp
from jax.experimental import pallas as pl
from jax.experimental.pallas import tpu as pltpu

LATENT_DIM = 128
HIDDEN_DIM = 256


def _round_up(n, m):
    return ((n + m - 1) // m) * m


def diffusion_mlp_kernel(t_ref, x_ref, n_ref,
                         w1_ref, b1_ref, w2_ref, b2_ref, w3_ref, b3_ref,
                         o_ref):
    """Fused noise-injection + 3-layer MLP: bf16 MXU inputs, f32 accumulation."""
    inv = 1.0 / (t_ref[0, 0] + 1.0)
    xn = x_ref[...] + n_ref[...] * inv
    x16 = xn.astype(jnp.bfloat16)
    h1 = jnp.dot(x16, w1_ref[...], preferred_element_type=jnp.float32) + b1_ref[...]
    h1 = jnp.maximum(h1, 0.0).astype(jnp.bfloat16)
    h2 = jnp.dot(h1, w2_ref[...], preferred_element_type=jnp.float32) + b2_ref[...]
    h2 = jnp.maximum(h2, 0.0).astype(jnp.bfloat16)
    out = jnp.dot(h2, w3_ref[...], preferred_element_type=jnp.float32) + b3_ref[...]
    o_ref[...] = out.astype(o_ref.dtype)


def diffusion_model_forward(x, t_scalar, params, *, noise=None, key=None, tb=256):
    """x: [B, LATENT_DIM] f32. t_scalar: python/np float.
    params: bf16 weights stored [in, out], f32 biases stored [1, out].

    noise=None  -> Gaussian noise sampled here with jax.random (randn_like semantics);
                   pass `key` for determinism.
    noise=[B,D] -> use the provided noise tensor (exactly reproducible; validation).
    """
    B, D = x.shape
    H = HIDDEN_DIM
    assert D == LATENT_DIM

    if noise is None:
        if key is None:
            key = jax.random.PRNGKey(0)
        noise = jax.random.normal(key, x.shape, x.dtype)

    # Batch tile: large enough to keep the MXU busy, clamped for small batches. Pad B to a
    # multiple of the tile, slice the padding off afterwards.
    tb_eff = min(tb, _round_up(B, 8))
    b_pad = _round_up(B, tb_eff)
    if b_pad != B:
        x = jnp.pad(x, ((0, b_pad - B), (0, 0)))
        noise = jnp.pad(noise, ((0, b_pad - B), (0, 0)))
    grid = (b_pad // tb_eff,)   # grid >= 2 lets v7x split the batch across both TensorCores

    rep = lambda i: (0, 0)      # weights replicated across the batch grid (constant index_map)
    row_spec = pl.BlockSpec((tb_eff, D), lambda i: (i, 0))
    weight_specs = [
        pl.BlockSpec((D, H), rep), pl.BlockSpec((1, H), rep),   # W1 [in,out], b1
        pl.BlockSpec((H, H), rep), pl.BlockSpec((1, H), rep),   # W2, b2
        pl.BlockSpec((H, D), rep), pl.BlockSpec((1, D), rep),   # W3, b3
    ]
    smem_spec = pl.BlockSpec(memory_space=pltpu.MemorySpace.SMEM)

    t_arr = jnp.full((1, 1), t_scalar, dtype=jnp.float32)
    weights = (params["w1"], params["b1"], params["w2"], params["b2"],
               params["w3"], params["b3"])

    flops = 2 * b_pad * (D * H + H * H + H * D)
    weight_bytes = 2 * (D * H + H * H + H * D) + 4 * (H + H + D)
    io_bytes = 4 * b_pad * D * 3   # x in, noise in, out
    compiler_params = pltpu.CompilerParams(
        dimension_semantics=("parallel",),
        vmem_limit_bytes=64 * 1024 * 1024,   # headroom for large tb (esp. v5e's 16 MiB default)
    )

    out = pl.pallas_call(
        diffusion_mlp_kernel,
        out_shape=jax.ShapeDtypeStruct((b_pad, D), jnp.float32),
        grid_spec=pltpu.PrefetchScalarGridSpec(
            num_scalar_prefetch=0,
            grid=grid,
            in_specs=[smem_spec, row_spec, row_spec, *weight_specs],
            out_specs=row_spec),
        compiler_params=compiler_params,
        cost_estimate=pl.CostEstimate(
            flops=flops, transcendentals=0,
            bytes_accessed=io_bytes + weight_bytes),
    )(t_arr, x, noise, *weights)

    return out[:B]


def init_params(key):
    """PyTorch-Linear-style init: U(-1/sqrt(fan_in), 1/sqrt(fan_in)).
    Weights stored transposed ([in, out]) in bf16 (MXU-native); biases kept f32."""
    k = jax.random.split(key, 6)

    def linear(kw, kb, fan_in, fan_out):
        bound = 1.0 / jnp.sqrt(fan_in)
        w = jax.random.uniform(kw, (fan_in, fan_out), jnp.float32, -bound, bound)
        b = jax.random.uniform(kb, (1, fan_out), jnp.float32, -bound, bound)
        return w.astype(jnp.bfloat16), b

    w1, b1 = linear(k[0], k[1], LATENT_DIM, HIDDEN_DIM)
    w2, b2 = linear(k[2], k[3], HIDDEN_DIM, HIDDEN_DIM)
    w3, b3 = linear(k[4], k[5], HIDDEN_DIM, LATENT_DIM)
    return dict(w1=w1, b1=b1, w2=w2, b2=b2, w3=w3, b3=b3)


def reference_forward(x, noise, t_scalar, p):
    """Pure-JAX reference with matching bf16 matmul inputs / f32 accumulation."""
    xn = (x + noise * (1.0 / (t_scalar + 1.0))).astype(jnp.bfloat16)
    h1 = jnp.maximum(jnp.dot(xn, p["w1"], preferred_element_type=jnp.float32) + p["b1"], 0.0)
    h2 = jnp.maximum(jnp.dot(h1.astype(jnp.bfloat16), p["w2"],
                             preferred_element_type=jnp.float32) + p["b2"], 0.0)
    return jnp.dot(h2.astype(jnp.bfloat16), p["w3"],
                   preferred_element_type=jnp.float32) + p["b3"]


if __name__ == "__main__":
    key = jax.random.PRNGKey(0)
    k_param, k_x, k_noise, k_rng = jax.random.split(key, 4)

    B = 8                     # small demo batch; latent_dim fixed at 128 by the module
    t = 3.0                   # diffusion timestep
    params = init_params(k_param)
    x = jax.random.normal(k_x, (B, LATENT_DIM), jnp.float32)

    # (1) Exact check: feed an explicit noise tensor so the kernel output is directly
    #     comparable against the pure-JAX reference.
    noise = jax.random.normal(k_noise, (B, LATENT_DIM), jnp.float32)
    out_ext = jax.block_until_ready(diffusion_model_forward(x, t, params, noise=noise))
    ref = reference_forward(x, noise, t, params)
    assert out_ext.shape == (B, LATENT_DIM)
    assert jnp.allclose(out_ext, ref, atol=2e-2, rtol=2e-2), "mismatch vs pure-JAX reference"

    # (2) randn_like-inside-forward semantics: noise sampled by the wrapper per call.
    # TODO(synk): torch.randn_like cannot be reproduced bit-exactly (different PRNG), so this
    # path is checked for shape/finiteness and that noise is actually injected.
    out = jax.block_until_ready(diffusion_model_forward(x, t, params, key=k_rng))
    ref_noiseless = reference_forward(x, jnp.zeros_like(x), t, params)
    assert out.shape == (B, LATENT_DIM)
    assert bool(jnp.all(jnp.isfinite(out)))
    assert float(jnp.max(jnp.abs(out - ref_noiseless))) > 1e-4  # noise was injected

    print("KERNEL_OK")
</pallas_src>

<mosaic_0001>
module attributes {stable_mosaic.version = 11 : i64} {
  func.func @diffusion_mlp_kernel(%arg0: i32, %arg1: memref<1x1xf32, #tpu.memory_space<smem>>, %arg2: memref<8x128xf32, #tpu.memory_space<vmem>>, %arg3: memref<8x128xf32, #tpu.memory_space<vmem>>, %arg4: memref<128x256xbf16, #tpu.memory_space<vmem>>, %arg5: memref<1x256xf32, #tpu.memory_space<vmem>>, %arg6: memref<256x256xbf16, #tpu.memory_space<vmem>>, %arg7: memref<1x256xf32, #tpu.memory_space<vmem>>, %arg8: memref<256x128xbf16, #tpu.memory_space<vmem>>, %arg9: memref<1x128xf32, #tpu.memory_space<vmem>>, %arg10: memref<8x128xf32, #tpu.memory_space<vmem>>) attributes {dimension_semantics = [#tpu.dimension_semantics<parallel>], iteration_bounds = array<i64: 1>, scalar_prefetch = 0 : i64, scratch_operands = 0 : i64, tpu.core_type = #tpu.core_type<tc>, window_params = [{transform_indices = @transform_0, window_bounds = array<i64: 1, 1>}, {transform_indices = @transform_1, window_bounds = array<i64: 8, 128>}, {transform_indices = @transform_2, window_bounds = array<i64: 8, 128>}, {pipeline_mode = #tpu.pipeline_mode<synchronous>, transform_indices = @transform_3, window_bounds = array<i64: 128, 256>}, {pipeline_mode = #tpu.pipeline_mode<synchronous>, transform_indices = @transform_4, window_bounds = array<i64: 1, 256>}, {pipeline_mode = #tpu.pipeline_mode<synchronous>, transform_indices = @transform_5, window_bounds = array<i64: 256, 256>}, {pipeline_mode = #tpu.pipeline_mode<synchronous>, transform_indices = @transform_6, window_bounds = array<i64: 1, 256>}, {pipeline_mode = #tpu.pipeline_mode<synchronous>, transform_indices = @transform_7, window_bounds = array<i64: 256, 128>}, {pipeline_mode = #tpu.pipeline_mode<synchronous>, transform_indices = @transform_8, window_bounds = array<i64: 1, 128>}, {transform_indices = @transform_9, window_bounds = array<i64: 8, 128>}]} {
    %c0 = arith.constant 0 : index
    %c0_0 = arith.constant 0 : index
    %0 = memref.load %arg1[%c0, %c0_0] : memref<1x1xf32, #tpu.memory_space<smem>>
    %cst = arith.constant 1.000000e+00 : f32
    %1 = arith.addf %0, %cst : f32
    %cst_1 = arith.constant 1.000000e+00 : f32
    %2 = arith.divf %cst_1, %1 : f32
    %c0_2 = arith.constant 0 : index
    %c0_3 = arith.constant 0 : index
    %3 = vector.load %arg2[%c0_2, %c0_3] : memref<8x128xf32, #tpu.memory_space<vmem>>, vector<8x128xf32>
    %c0_4 = arith.constant 0 : index
    %c0_5 = arith.constant 0 : index
    %4 = vector.load %arg3[%c0_4, %c0_5] : memref<8x128xf32, #tpu.memory_space<vmem>>, vector<8x128xf32>
    %5 = vector.broadcast %2 : f32 to vector<8x128xf32>
    %6 = arith.mulf %4, %5 : vector<8x128xf32>
    %7 = arith.addf %3, %6 : vector<8x128xf32>
    %8 = arith.truncf %7 : vector<8x128xf32> to vector<8x128xbf16>
    %c0_6 = arith.constant 0 : index
    %c0_7 = arith.constant 0 : index
    %9 = vector.load %arg4[%c0_6, %c0_7] : memref<128x256xbf16, #tpu.memory_space<vmem>>, vector<128x256xbf16>
    %cst_8 = arith.constant dense<0.000000e+00> : vector<8x256xf32>
    %10 = tpu.matmul %8, %9, %cst_8 {dimension_numbers = #tpu.dot_dimension_numbers<[1], [0], [0], [1], [0, 0, 1, 1], [], []>} : vector<8x128xbf16>, vector<128x256xbf16>, vector<8x256xf32> -> vector<8x256xf32>
    %c0_9 = arith.constant 0 : index
    %c0_10 = arith.constant 0 : index
    %11 = vector.load %arg5[%c0_9, %c0_10] : memref<1x256xf32, #tpu.memory_space<vmem>>, vector<1x256xf32>
    %12 = vector.broadcast %11 : vector<1x256xf32> to vector<8x256xf32>
    %13 = arith.addf %10, %12 : vector<8x256xf32>
    %cst_11 = arith.constant 0.000000e+00 : f32
    %14 = vector.broadcast %cst_11 : f32 to vector<8x256xf32>
    %15 = arith.maximumf %13, %14 : vector<8x256xf32>
    %16 = arith.truncf %15 : vector<8x256xf32> to vector<8x256xbf16>
    %c0_12 = arith.constant 0 : index
    %c0_13 = arith.constant 0 : index
    %17 = vector.load %arg6[%c0_12, %c0_13] : memref<256x256xbf16, #tpu.memory_space<vmem>>, vector<256x256xbf16>
    %cst_14 = arith.constant dense<0.000000e+00> : vector<8x256xf32>
    %18 = tpu.matmul %16, %17, %cst_14 {dimension_numbers = #tpu.dot_dimension_numbers<[1], [0], [0], [1], [0, 0, 1, 1], [], []>} : vector<8x256xbf16>, vector<256x256xbf16>, vector<8x256xf32> -> vector<8x256xf32>
    %c0_15 = arith.constant 0 : index
    %c0_16 = arith.constant 0 : index
    %19 = vector.load %arg7[%c0_15, %c0_16] : memref<1x256xf32, #tpu.memory_space<vmem>>, vector<1x256xf32>
    %20 = vector.broadcast %19 : vector<1x256xf32> to vector<8x256xf32>
    %21 = arith.addf %18, %20 : vector<8x256xf32>
    %cst_17 = arith.constant 0.000000e+00 : f32
    %22 = vector.broadcast %cst_17 : f32 to vector<8x256xf32>
    %23 = arith.maximumf %21, %22 : vector<8x256xf32>
    %24 = arith.truncf %23 : vector<8x256xf32> to vector<8x256xbf16>
    %c0_18 = arith.constant 0 : index
    %c0_19 = arith.constant 0 : index
    %25 = vector.load %arg8[%c0_18, %c0_19] : memref<256x128xbf16, #tpu.memory_space<vmem>>, vector<256x128xbf16>
    %cst_20 = arith.constant dense<0.000000e+00> : vector<8x128xf32>
    %26 = tpu.matmul %24, %25, %cst_20 {dimension_numbers = #tpu.dot_dimension_numbers<[1], [0], [0], [1], [0, 0, 1, 1], [], []>} : vector<8x256xbf16>, vector<256x128xbf16>, vector<8x128xf32> -> vector<8x128xf32>
    %c0_21 = arith.constant 0 : index
    %c0_22 = arith.constant 0 : index
    %27 = vector.load %arg9[%c0_21, %c0_22] : memref<1x128xf32, #tpu.memory_space<vmem>>, vector<1x128xf32>
    %28 = vector.broadcast %27 : vector<1x128xf32> to vector<8x128xf32>
    %29 = arith.addf %26, %28 : vector<8x128xf32>
    %c0_23 = arith.constant 0 : index
    %c0_24 = arith.constant 0 : index
    %30 = vector.load %arg10[%c0_23, %c0_24] : memref<8x128xf32, #tpu.memory_space<vmem>>, vector<8x128xf32>
    tpu.vector_store %arg10[%c0_23, %c0_24], %29 {strides = array<i32>} : memref<8x128xf32, #tpu.memory_space<vmem>>, vector<8x128xf32>,
    return
  }
  func.func @transform_0(%arg0: i32) -> (i32, i32) {
    %c0_i32 = arith.constant 0 : i32
    %c0_i32_0 = arith.constant 0 : i32
    %c0_i32_1 = arith.constant 0 : i32
    return %c0_i32, %c0_i32_0 : i32, i32
  }
  func.func @transform_1(%arg0: i32) -> (i32, i32) {
    %c0_i32 = arith.constant 0 : i32
    %c0_i32_0 = arith.constant 0 : i32
    return %arg0, %c0_i32 : i32, i32
  }
  func.func @transform_2(%arg0: i32) -> (i32, i32) {
    %c0_i32 = arith.constant 0 : i32
    %c0_i32_0 = arith.constant 0 : i32
    return %arg0, %c0_i32 : i32, i32
  }
  func.func @transform_3(%arg0: i32) -> (i32, i32) {
    %c0_i32 = arith.constant 0 : i32
    %c0_i32_0 = arith.constant 0 : i32
    %c0_i32_1 = arith.constant 0 : i32
    return %c0_i32, %c0_i32_0 : i32, i32
  }
  func.func @transform_4(%arg0: i32) -> (i32, i32) {
    %c0_i32 = arith.constant 0 : i32
    %c0_i32_0 = arith.constant 0 : i32
    %c0_i32_1 = arith.constant 0 : i32
    return %c0_i32, %c0_i32_0 : i32, i32
  }
  func.func @transform_5(%arg0: i32) -> (i32, i32) {
    %c0_i32 = arith.constant 0 : i32
    %c0_i32_0 = arith.constant 0 : i32
    %c0_i32_1 = arith.constant 0 : i32
    return %c0_i32, %c0_i32_0 : i32, i32
  }
  func.func @transform_6(%arg0: i32) -> (i32, i32) {
    %c0_i32 = arith.constant 0 : i32
    %c0_i32_0 = arith.constant 0 : i32
    %c0_i32_1 = arith.constant 0 : i32
    return %c0_i32, %c0_i32_0 : i32, i32
  }
  func.func @transform_7(%arg0: i32) -> (i32, i32) {
    %c0_i32 = arith.constant 0 : i32
    %c0_i32_0 = arith.constant 0 : i32
    %c0_i32_1 = arith.constant 0 : i32
    return %c0_i32, %c0_i32_0 : i32, i32
  }
  func.func @transform_8(%arg0: i32) -> (i32, i32) {
    %c0_i32 = arith.constant 0 : i32
    %c0_i32_0 = arith.constant 0 : i32
    %c0_i32_1 = arith.constant 0 : i32
    return %c0_i32, %c0_i32_0 : i32, i32
  }
  func.func @transform_9(%arg0: i32) -> (i32, i32) {
    %c0_i32 = arith.constant 0 : i32
    %c0_i32_0 = arith.constant 0 : i32
    return %arg0, %c0_i32 : i32, i32
  }
}

</mosaic_0001>

<bundles_post_ra>
// kernel: tpu_custom_call.1
= control target key start
LH: loop header
LB: loop body
LE: loop exit
PB: predicated region body
PF: predicated region fallthrough
CT: control target
= control target key end

     0   :  { %15 = vsyncpa [#allocation4], 0  ;;  %s1279_s0 = inlined_call_operand.<no memory space> [shape: f32[1,1], index: 0, kind: input, shape index: {}]   ;;  %s1280_s1 = inlined_call_operand.hbm [shape: f32[8,128], index: 1, kind: input, shape index: {}]   ;;  %s1281_s2 = inlined_call_operand.hbm [shape: f32[8,128], index: 2, kind: input, shape index: {}]   ;;  %s1282_s3 = inlined_call_operand.hbm [shape: bf16[128,256], index: 3, kind: input, shape index: {}]   ;;  %s1283_s4 = inlined_call_operand.vmem [shape: f32[1,256], index: 4, kind: input, shape index: {}]   ;;  %s1284_s5 = inlined_call_operand.hbm [shape: bf16[256,256], index: 5, kind: input, shape index: {}]   ;;  %s1285_s6 = inlined_call_operand.vmem [shape: f32[1,256], index: 6, kind: input, shape index: {}]   ;;  %s1286_s7 = inlined_call_operand.hbm [shape: bf16[256,128], index: 7, kind: input, shape index: {}]   ;;  %s1287_s8 = inlined_call_operand.vmem [shape: f32[1,128], index: 8, kind: input, shape index: {}]   ;;  %s1288_s9 = inlined_call_operand.hbm [shape: f32[8,128], index: 9, kind: output, shape index: {}]  }
   0x1   :  { %16 = vsyncpa [#allocation7], 0 }
   0x2   :  { %17 = vsyncpa [#allocation10], 0  ;;  %s37_s11 = sshll.u32 %s1281_s2, 4  ;;  %s38_s11 = int_to_ptr.hbm [resolvable:$true] %s37_s11 }
   0x3   :  { %18 = vsyncpa [#allocation5], 0  ;;  %s1183_s12 = smov [#allocation6]   ;;  %s62_s16 = sshll.u32 %s1284_s5, 4  ;;  %s63_s16 = int_to_ptr.hbm [resolvable:$true] %s62_s16 }
   0x4   :  { %s39_s13 = sshll.u32 %s1183_s12, 4  ;;  %s1184_s17 = smov [#allocation9]   ;;  %s40_s13 = int_to_ptr.vmem [resolvable:$true] %s39_s13 }
   0x5   :  { %42 = dma.hbm_to_vmem [thread:$0]  %s38_s11, 128, %s40_s13, [#allocation7]  }
   0x6   :  { %s64_s18 = sshll.u32 %s1184_s17, 4  ;;  %s26_s21 = sshll.u32 %s1280_s1, 4  ;;  %s65_s18 = int_to_ptr.vmem [resolvable:$true] %s64_s18  ;;  %s27_s21 = int_to_ptr.hbm [resolvable:$true] %s26_s21 }
   0x7   :  { %s1185_s2 = smov 128   ;;  %s1186_s22 = smov 8  }
   0x8   :  { %70 = dma.hbm_to_vmem [thread:$0]  %s63_s16, 4096, %s65_s18, [#allocation10], %s1185_s2, %s1185_s2, %s1186_s22  }
   0x9   :  { %s47_s25 = sshll.u32 %s1282_s3, 4  ;;  %s1187_s26 = smov [#allocation3]   ;;  %s48_s25 = int_to_ptr.hbm [resolvable:$true] %s47_s25 }
   0xa   :  { %s28_s27 = sshll.u32 %s1187_s26, 4  ;;  %s1188_s5 = smov [#allocation8]   ;;  %s29_s27 = int_to_ptr.vmem [resolvable:$true] %s28_s27 }
   0xb   :  { %31 = dma.hbm_to_vmem [thread:$0]  %s27_s21, 128, %s29_s27, [#allocation4]  }
   0xc   :  { %s49_s28 = sshll.u32 %s1188_s5, 4  ;;  %s77_s1 = sshll.u32 %s1286_s7, 4  ;;  %s50_s28 = int_to_ptr.vmem [resolvable:$true] %s49_s28  ;;  %s78_s1 = int_to_ptr.hbm [resolvable:$true] %s77_s1 }
   0xd   :  { %55 = dma.hbm_to_vmem [thread:$0]  %s48_s25, 2048, %s50_s28, [#allocation7], %s1185_s2, %s1185_s2, %s1186_s22  }
   0xe   :  { %s1189_s10 = smov [#allocation11]   ;;  %s1190_s12 = smov 64  }
   0xf   :  { %s79_s11 = sshll.u32 %s1189_s10, 4  ;;  %s1191_s13 = smov 4   ;;  %s80_s11 = int_to_ptr.vmem [resolvable:$true] %s79_s11 }
  0x10   :  { %85 = dma.hbm_to_vmem [thread:$0]  %s78_s1, 2048, %s80_s11, [#allocation10], %s1190_s12, %s1190_s12, %s1191_s13  }
  0x11   :  { %1175 = dma.done.wait [#allocation4], 128  }
  0x12   :  { %1176 = vsyncadd [#allocation4], 4294967168 }
  0x13   :  { %1177 = dma.done.wait [#allocation7], 2176  }
  0x14   :  { %1178 = vsyncadd [#allocation7], 4294965120  ;;  %s109_s15 = sadd.f32 1.0, %s1279_s0 }
  0x15   :  { %1179 = dma.done.wait [#allocation10], 6144  }
  0x16   :  { %1180 = vsyncadd [#allocation10], 4294961152  ;;  %v110_v0 = vstv %s109_s15  ;;  %v754_v1 = vld [vmem:[#allocation8 + $0x70] sm:$0xf]  ;;  %v967_v2 = vld [vmem:[#allocation8 + $0x74] sm:$0xf0] }
  0x17   :  { %1029 = vrcp.f32 %v110_v0  ;;  %v966_v3 = vld [vmem:[#allocation8 + $0x74] sm:$0xf]  ;;  %v755_v4 = vor.u32 %v967_v2, %v754_v1  ;;  %v756_v5 = vld [vmem:[#allocation8 + $0x78] sm:$0xf0]  ;;  %v746_v6 = vld [vmem:[#allocation8 + $0x60] sm:$0xf]  ;;  %vm116_vm0 = vweird.f32 %v110_v0 }
  0x18   :  { %v965_v7 = vld [vmem:[#allocation8 + $0x64] sm:$0xf0]  ;;  %v759_v9 = vor.u32 %v966_v3, %v756_v5  ;;  %v964_v10 = vld [vmem:[#allocation8 + $0x64] sm:$0xf]  ;;  %v748_v11 = vld [vmem:[#allocation8 + $0x68] sm:$0xf0] }
  0x19   :  { %v122_v13 = vand.u32 2147483648, %v110_v0  ;;  %234 = vmatpush.bf16.msra.mxu0 %v755_v4  ;;  %v747_v14 = vor.u32 %v965_v7, %v746_v6  ;;  %v120_v15 = vand.u32 2147483647, %v110_v0  ;;  %v751_v16 = vor.u32 %v964_v10, %v748_v11  ;;  %v738_v17 = vld [vmem:[#allocation8 + $0x50] sm:$0xf]  ;;  %s1192_s19 = smov [#allocation12]  }
  0x1a   :  { %247 = vmatpush.bf16.msra.mxu1 %v759_v9  ;;  %v963_v18 = vld [vmem:[#allocation8 + $0x54] sm:$0xf0]  ;;  %v962_v20 = vld [vmem:[#allocation8 + $0x54] sm:$0xf]  ;;  %v740_v21 = vld [vmem:[#allocation8 + $0x58] sm:$0xf0] }
  0x1b   :  { %v123_v24 = vor.u32 1.1754944e-38, %v122_v13  ;;  %v739_v25 = vor.u32 %v963_v18, %v738_v17  ;;  %v743_v26 = vor.u32 %v962_v20, %v740_v21  ;;  %v730_v27 = vld [vmem:[#allocation8 + $0x40] sm:$0xf]  ;;  %v961_v28 = vld [vmem:[#allocation8 + $0x44] sm:$0xf0]  ;;  %vm121_vm3 = vcmp.eq.f32.partialorder %v120_v15, 8.507059e+37 }
  0x1c   :  { %v960_v30 = vld [vmem:[#allocation8 + $0x44] sm:$0xf]  ;;  %v732_v31 = vld [vmem:[#allocation8 + $0x48] sm:$0xf0]  ;;  %v731_v33 = vor.u32 %v961_v28, %v730_v27  ;;  %v722_v36 = vld [vmem:[#allocation8 + $0x30] sm:$0xf] }
  0x1d   :  { %v1030_v8 = vpop.eup %1029  ;;  %235 = vmatpush.bf16.msra.mxu0 %v747_v14  ;;  %v735_v35 = vor.u32 %v960_v30, %v732_v31  ;;  %v959_v37 = vld [vmem:[#allocation8 + $0x34] sm:$0xf0]  ;;  %v958_v38 = vld [vmem:[#allocation8 + $0x34] sm:$0xf]  ;;  %v724_v39 = vld [vmem:[#allocation8 + $0x38] sm:$0xf0] }
  0x1e   :  { %v112_v12 = vmul.f32 %v1030_v8, %v110_v0  ;;  %vm117_vm1 = vweird.f32 %v1030_v8  ;;  %248 = vmatpush.bf16.msra.mxu1 %v751_v16  ;;  %v723_v40 = vor.u32 %v959_v37, %v722_v36  ;;  %v727_v41 = vor.u32 %v958_v38, %v724_v39  ;;  %v714_v42 = vld [vmem:[#allocation8 + $0x20] sm:$0xf]  ;;  %v957_v43 = vld [vmem:[#allocation8 + $0x24] sm:$0xf0]  ;;  %v956_v44 = vld [vmem:[#allocation8 + $0x24] sm:$0xf] }
  0x1f   :  { %vm1261_vm2 = vmor %vm116_vm0, %vm117_vm1  ;;  %v716_v45 = vld [vmem:[#allocation8 + $0x28] sm:$0xf0]  ;;  %v715_v46 = vor.u32 %v957_v43, %v714_v42  ;;  %v706_v48 = vld [vmem:[#allocation8 + $0x10] sm:$0xf]  ;;  %s682_s20 = sshll.u32 %s1192_s19, 4  ;;  %s684_s22 = sshll.u32 %s1288_s9, 4  ;;  %s683_s20 = int_to_ptr.vmem [resolvable:$true] %s682_s20  ;;  %s685_s22 = int_to_ptr.hbm [resolvable:$true] %s684_s22 }
  0x20   :  { %v113_v19 = vsub.f32 1.0, %v112_v12  ;;  %v719_v47 = vor.u32 %v956_v44, %v716_v45  ;;  %v955_v49 = vld [vmem:[#allocation8 + $0x14] sm:$0xf0]  ;;  %v954_v50 = vld [vmem:[#allocation8 + $0x14] sm:$0xf] }
  0x21   :  { %236 = vmatpush.bf16.msra.mxu0 %v739_v25  ;;  %v707_v51 = vor.u32 %v955_v49, %v706_v48  ;;  %v708_v52 = vld [vmem:[#allocation8 + $0x18] sm:$0xf0]  ;;  %v698_v54 = vld [vmem:[#allocation8] sm:$0xf]  ;;  %v953_v55 = vld [vmem:[#allocation8 + $0x4] sm:$0xf0] }
  0x22   :  { %v114_v22 = vmul.f32 %v1030_v8, %v113_v19  ;;  %249 = vmatpush.bf16.msra.mxu1 %v743_v26  ;;  %v711_v53 = vor.u32 %v954_v50, %v708_v52  ;;  %v952_v56 = vld [vmem:[#allocation8 + $0x4] sm:$0xf]  ;;  %v699_v57 = vor.u32 %v953_v55, %v698_v54  ;;  %v700_v58 = vld [vmem:[#allocation8 + $0x8] sm:$0xf0]  ;;  %v818_v60 = vld [vmem:[#allocation9 + $0x70] sm:$0xf] }
  0x23   :  { %v703_v59 = vor.u32 %v952_v56, %v700_v58  ;;  %v983_v61 = vld [vmem:[#allocation9 + $0x74] sm:$0xf0]  ;;  %v882_v62 = vld [vmem:[#allocation9 + $0xf0] sm:$0xf]  ;;  %v982_v1 = vld [vmem:[#allocation9 + $0x74] sm:$0xf] }
  0x24   :  { %v115_v29 = vadd.f32 %v1030_v8, %v114_v22  ;;  %v819_v63 = vor.u32 %v983_v61, %v818_v60  ;;  %v999_v0 = vld [vmem:[#allocation9 + $0xf4] sm:$0xf0]  ;;  %v820_v2 = vld [vmem:[#allocation9 + $0x78] sm:$0xf0]  ;;  %v998_v5 = vld [vmem:[#allocation9 + $0xf4] sm:$0xf] }
  0x25   :  { %237 = vmatpush.bf16.msra.mxu0 %v731_v33  ;;  %v883_v3 = vor.u32 %v999_v0, %v882_v62  ;;  %v823_v4 = vor.u32 %v982_v1, %v820_v2  ;;  %v884_v6 = vld [vmem:[#allocation9 + $0xf8] sm:$0xf0]  ;;  %v810_v7 = vld [vmem:[#allocation9 + $0x60] sm:$0xf]  ;;  %v981_v9 = vld [vmem:[#allocation9 + $0x64] sm:$0xf0] }
  0x26   :  { %v119_v32 = vsel %vm1261_vm2, %v1030_v8, %v115_v29  ;;  %250 = vmatpush.bf16.msra.mxu1 %v735_v35  ;;  %462 = vmatpush.bf16.msra.mxu2 %v819_v63  ;;  %v887_v8 = vor.u32 %v998_v5, %v884_v6  ;;  %v874_v10 = vld [vmem:[#allocation9 + $0xe0] sm:$0xf]  ;;  %v997_v11 = vld [vmem:[#allocation9 + $0xe4] sm:$0xf0]  ;;  %v811_v12 = vor.u32 %v981_v9, %v810_v7  ;;  %v980_v14 = vld [vmem:[#allocation9 + $0x64] sm:$0xf] }
  0x27   :  { %v124_v34 = vsel %vm121_vm3, %v123_v24, %v119_v32  ;;  %475 = vmatpush.bf16.msra.mxu3 %v883_v3  ;;  %v875_v13 = vor.u32 %v997_v11, %v874_v10  ;;  %v812_v15 = vld [vmem:[#allocation9 + $0x68] sm:$0xf0]  ;;  %v996_v16 = vld [vmem:[#allocation9 + $0xe4] sm:$0xf]  ;;  %v802_v19 = vld [vmem:[#allocation9 + $0x50] sm:$0xf] }
  0x28   :  { %1016 = vpush %v124_v34  ;;  %v815_v17 = vor.u32 %v980_v14, %v812_v15  ;;  %v876_v18 = vld [vmem:[#allocation9 + $0xe8] sm:$0xf0]  ;;  %v979_v20 = vld [vmem:[#allocation9 + $0x54] sm:$0xf0]  ;;  %v866_v22 = vld [vmem:[#allocation9 + $0xd0] sm:$0xf] }
  0x29   :  { %238 = vmatpush.bf16.msra.mxu0 %v723_v40  ;;  %v879_v21 = vor.u32 %v996_v16, %v876_v18  ;;  %v995_v23 = vld [vmem:[#allocation9 + $0xd4] sm:$0xf0]  ;;  %v978_v24 = vld [vmem:[#allocation9 + $0x54] sm:$0xf]  ;;  %v803_v25 = vor.u32 %v979_v20, %v802_v19  ;;  %v804_v26 = vld [vmem:[#allocation9 + $0x58] sm:$0xf0] }
  0x2a   :  { %251 = vmatpush.bf16.msra.mxu1 %v727_v41  ;;  %463 = vmatpush.bf16.msra.mxu2 %v811_v12  ;;  %v994_v27 = vld [vmem:[#allocation9 + $0xd4] sm:$0xf]  ;;  %v868_v28 = vld [vmem:[#allocation9 + $0xd8] sm:$0xf0]  ;;  %v867_v29 = vor.u32 %v995_v23, %v866_v22  ;;  %v807_v30 = vor.u32 %v978_v24, %v804_v26  ;;  %v794_v31 = vld [vmem:[#allocation9 + $0x40] sm:$0xf] }
  0x2b   :  { %476 = vmatpush.bf16.msra.mxu3 %v875_v13  ;;  %v977_v32 = vld [vmem:[#allocation9 + $0x44] sm:$0xf0]  ;;  %v858_v33 = vld [vmem:[#allocation9 + $0xc0] sm:$0xf]  ;;  %v871_v34 = vor.u32 %v994_v27, %v868_v28  ;;  %v976_v36 = vld [vmem:[#allocation9 + $0x44] sm:$0xf] }
  0x2c   :  { %v993_v35 = vld [vmem:[#allocation9 + $0xc4] sm:$0xf0]  ;;  %v796_v37 = vld [vmem:[#allocation9 + $0x48] sm:$0xf0]  ;;  %v992_v38 = vld [vmem:[#allocation9 + $0xc4] sm:$0xf]  ;;  %v795_v40 = vor.u32 %v977_v32, %v794_v31 }
  0x2d   :  { %239 = vmatpush.bf16.msra.mxu0 %v715_v46  ;;  %v860_v39 = vld [vmem:[#allocation9 + $0xc8] sm:$0xf0]  ;;  %v859_v41 = vor.u32 %v993_v35, %v858_v33  ;;  %v799_v42 = vor.u32 %v976_v36, %v796_v37  ;;  %v786_v43 = vld [vmem:[#allocation9 + $0x30] sm:$0xf]  ;;  %v975_v44 = vld [vmem:[#allocation9 + $0x34] sm:$0xf0] }
  0x2e   :  { %252 = vmatpush.bf16.msra.mxu1 %v719_v47  ;;  %464 = vmatpush.bf16.msra.mxu2 %v803_v25  ;;  %v850_v45 = vld [vmem:[#allocation9 + $0xb0] sm:$0xf]  ;;  %v863_v46 = vor.u32 %v992_v38, %v860_v39  ;;  %v991_v47 = vld [vmem:[#allocation9 + $0xb4] sm:$0xf0]  ;;  %v974_v48 = vld [vmem:[#allocation9 + $0x34] sm:$0xf]  ;;  %v787_v52 = vor.u32 %v975_v44, %v786_v43 }
  0x2f   :  { %477 = vmatpush.bf16.msra.mxu3 %v867_v29  ;;  %v788_v49 = vld [vmem:[#allocation9 + $0x38] sm:$0xf0]  ;;  %v990_v50 = vld [vmem:[#allocation9 + $0xb4] sm:$0xf]  ;;  %v778_v55 = vld [vmem:[#allocation9 + $0x20] sm:$0xf] }
  0x30   :  { %v791_v54 = vor.u32 %v974_v48, %v788_v49  ;;  %v973_v56 = vld [vmem:[#allocation9 + $0x24] sm:$0xf0]  ;;  %v972_v60 = vld [vmem:[#allocation9 + $0x24] sm:$0xf]  ;;  %v780_v61 = vld [vmem:[#allocation9 + $0x28] sm:$0xf0] }
  0x31   :  { %240 = vmatpush.bf16.msra.mxu0 %v707_v51  ;;  %v852_v51 = vld [vmem:[#allocation9 + $0xb8] sm:$0xf0]  ;;  %v988_v62 = vld [vmem:[#allocation9 + $0xa4] sm:$0xf]  ;;  %v844_v63 = vld [vmem:[#allocation9 + $0xa8] sm:$0xf0]  ;;  %v779_v0 = vor.u32 %v973_v56, %v778_v55  ;;  %v783_v2 = vor.u32 %v972_v60, %v780_v61 }
  0x32   :  { %253 = vmatpush.bf16.msra.mxu1 %v711_v53  ;;  %465 = vmatpush.bf16.msra.mxu2 %v795_v40  ;;  %v851_v53 = vor.u32 %v991_v47, %v850_v45  ;;  %v855_v58 = vor.u32 %v990_v50, %v852_v51  ;;  %v847_v3 = vor.u32 %v988_v62, %v844_v63  ;;  %v126_v6 = vld [vmem:[#allocation3] sm:$0xff]  ;;  %v971_v11 = vld [vmem:[#allocation9 + $0x14] sm:$0xf0]  ;;  %v772_v16 = vld [vmem:[#allocation9 + $0x18] sm:$0xf0] }
  0x33   :  { %478 = vmatpush.bf16.msra.mxu3 %v859_v41  ;;  %v770_v10 = vld [vmem:[#allocation9 + $0x10] sm:$0xf]  ;;  %v987_v14 = vld [vmem:[#allocation9 + $0x94] sm:$0xf0]  ;;  %v970_v15 = vld [vmem:[#allocation9 + $0x14] sm:$0xf] }
  0x34   :  { %v834_v12 = vld [vmem:[#allocation9 + $0x90] sm:$0xf]  ;;  %v771_v13 = vor.u32 %v971_v11, %v770_v10  ;;  %v775_v18 = vor.u32 %v970_v15, %v772_v16  ;;  %v986_v19 = vld [vmem:[#allocation9 + $0x94] sm:$0xf]  ;;  %v836_v20 = vld [vmem:[#allocation9 + $0x98] sm:$0xf0] }
  0x35   :  { %241 = vmatpush.bf16.msra.mxu0 %v699_v57  ;;  %v842_v57 = vld [vmem:[#allocation9 + $0xa0] sm:$0xf]  ;;  %v969_v23 = vld [vmem:[#allocation9 + $0x4] sm:$0xf0]  ;;  %v968_v27 = vld [vmem:[#allocation9 + $0x4] sm:$0xf] }
  0x36   :  { %254 = vmatpush.bf16.msra.mxu1 %v703_v59  ;;  %v989_v59 = vld [vmem:[#allocation9 + $0xa4] sm:$0xf0]  ;;  %466 = vmatpush.bf16.msra.mxu2 %v787_v52  ;;  %v762_v22 = vld [vmem:[#allocation9] sm:$0xf]  ;;  %v764_v28 = vld [vmem:[#allocation9 + $0x8] sm:$0xf0] }
  0x37   :  { %479 = vmatpush.bf16.msra.mxu3 %v851_v53  ;;  %v843_v1 = vor.u32 %v989_v59, %v842_v57  ;;  %v826_v24 = vld [vmem:[#allocation9 + $0x80] sm:$0xf]  ;;  %v763_v25 = vor.u32 %v969_v23, %v762_v22  ;;  %v985_v26 = vld [vmem:[#allocation9 + $0x84] sm:$0xf0]  ;;  %v984_v31 = vld [vmem:[#allocation9 + $0x84] sm:$0xf] }
  0x38   :  { %v827_v29 = vor.u32 %v985_v26, %v826_v24  ;;  %v828_v32 = vld [vmem:[#allocation9 + $0x88] sm:$0xf0]  ;;  %v1007_v35 = vld [vmem:[#allocation11 + $0x38] sm:$0xff]  ;;  %v1014_v36 = vld [vmem:[#allocation11 + $0x70] sm:$0xff] }
  0x39   :  { %488 = vmatpush.bf16.msrb.mxu0 %v823_v4  ;;  %v127_v4 = vld [vmem:[#allocation6] sm:$0xff]  ;;  %v831_v33 = vor.u32 %v984_v31, %v828_v32  ;;  %v1006_v37 = vld [vmem:[#allocation11 + $0x30] sm:$0xff]  ;;  %v1013_v38 = vld [vmem:[#allocation11 + $0x68] sm:$0xff] }
  0x3a   :  { %501 = vmatpush.bf16.msrb.mxu1 %v887_v8  ;;  %467 = vmatpush.bf16.msra.mxu2 %v779_v0  ;;  %v1005_v39 = vld [vmem:[#allocation11 + $0x28] sm:$0xff]  ;;  %v1012_v40 = vld [vmem:[#allocation11 + $0x60] sm:$0xff]  ;;  %v148_v43 = vld [vmem:[%s1283_s4] sm:$0x3] }
  0x3b   :  { %480 = vmatpush.bf16.msra.mxu3 %v843_v1  ;;  %v1004_v41 = vld [vmem:[#allocation11 + $0x20] sm:$0xff]  ;;  %v1010_v44 = vld [vmem:[#allocation11 + $0x50] sm:$0xff]  ;;  %v150_v45 = vperm.slane %v148_v43, 0  ;;  %v1003_v57 = vld [vmem:[#allocation11 + $0x18] sm:$0xff] }
  0x3c   :  { %v1002_v59 = vld [vmem:[#allocation11 + $0x10] sm:$0xff]  ;;  %v1008_v60 = vld [vmem:[#allocation11 + $0x40] sm:$0xff]  ;;  %v1001_v61 = vld [vmem:[#allocation11 + $0x8] sm:$0xff] }
  0x3d   :  { %489 = vmatpush.bf16.msrb.mxu0 %v815_v17  ;;  %v835_v17 = vor.u32 %v987_v14, %v834_v12  ;;  %v1000_v62 = vld [vmem:[#allocation11] sm:$0xff]  ;;  %v296_v63 = vld [vmem:[%s1285_s6] sm:$0x3] }
  0x3e   :  { %502 = vmatpush.bf16.msrb.mxu1 %v879_v21  ;;  %468 = vmatpush.bf16.msra.mxu2 %v771_v13  ;;  %v839_v21 = vor.u32 %v986_v19, %v836_v20  ;;  %v299_v0 = vperm.slane %v296_v63, 1  ;;  %v1028_v19 = vld [vmem:[%s1287_s8] ss:$0 sm:$0xff] }
  0x3f   :  { %481 = vmatpush.bf16.msra.mxu3 %v835_v17 }
  0x41   :  { %490 = vmatpush.bf16.msrb.mxu0 %v807_v30  ;;  %v767_v30 = vor.u32 %v968_v27, %v764_v28 }
  0x42   :  { %503 = vmatpush.bf16.msrb.mxu1 %v871_v34  ;;  %469 = vmatpush.bf16.msra.mxu2 %v763_v25  ;;  %v1015_v34 = vld [vmem:[#allocation11 + $0x78] sm:$0xff] }
  0x43   :  { %482 = vmatpush.bf16.msra.mxu3 %v827_v29 }
  0x45   :  { %491 = vmatpush.bf16.msrb.mxu0 %v799_v42  ;;  %v1011_v42 = vld [vmem:[#allocation11 + $0x58] sm:$0xff] }
  0x46   :  { %504 = vmatpush.bf16.msrb.mxu1 %v863_v46  ;;  %650 = vmatpush.bf16.msrb.mxu2 %v1007_v35  ;;  %v151_v46 = vperm.slane %v148_v43, 1 }
  0x47   :  { %663 = vmatpush.bf16.msrb.mxu3 %v1015_v34 }
  0x49   :  { %492 = vmatpush.bf16.msrb.mxu0 %v791_v54 }
  0x4a   :  { %505 = vmatpush.bf16.msrb.mxu1 %v855_v58  ;;  %651 = vmatpush.bf16.msrb.mxu2 %v1006_v37  ;;  %v1009_v58 = vld [vmem:[#allocation11 + $0x48] sm:$0xff] }
  0x4b   :  { %664 = vmatpush.bf16.msrb.mxu3 %v1014_v36 }
  0x4d   :  { %493 = vmatpush.bf16.msrb.mxu0 %v783_v2 }
  0x4e   :  { %506 = vmatpush.bf16.msrb.mxu1 %v847_v3  ;;  %652 = vmatpush.bf16.msrb.mxu2 %v1005_v39 }
  0x4f   :  { %665 = vmatpush.bf16.msrb.mxu3 %v1013_v38 }
  0x51   :  { %494 = vmatpush.bf16.msrb.mxu0 %v775_v18 }
  0x52   :  { %507 = vmatpush.bf16.msrb.mxu1 %v839_v21  ;;  %653 = vmatpush.bf16.msrb.mxu2 %v1004_v41 }
  0x53   :  { %666 = vmatpush.bf16.msrb.mxu3 %v1012_v40 }
  0x55   :  { %495 = vmatpush.bf16.msrb.mxu0 %v767_v30 }
  0x56   :  { %508 = vmatpush.bf16.msrb.mxu1 %v831_v33  ;;  %654 = vmatpush.bf16.msrb.mxu2 %v1003_v57 }
  0x57   :  { %667 = vmatpush.bf16.msrb.mxu3 %v1011_v42 }
  0x59   :  { %s1017_s0 = spop %1016 }
  0x5a   :  { %v128_v5 = vstv %s1017_s0  ;;  %655 = vmatpush.bf16.msrb.mxu2 %v1002_v59 }
  0x5b   :  { %v129_v7 = vmul.f32 %v128_v5, %v127_v4  ;;  %668 = vmatpush.bf16.msrb.mxu3 %v1010_v44  ;;  %v298_v4 = vperm.slane %v296_v63, 0 }
  0x5d   :  { %v130_v8 = vadd.f32 %v129_v7, %v126_v6 }
  0x5e   :  { %656 = vmatpush.bf16.msrb.mxu2 %v1001_v61 }
  0x5f   :  { %v131_v9 = vpack.c.bf16 %v130_v8, %v130_v8  ;;  %669 = vmatpush.bf16.msrb.mxu3 %v1009_v58 }
  0x61   :  { %242 = vmatmul.bf16.vlgmr.msra.gmra.mxu0 %v131_v9  ;;  %255 = vmatmul.bf16.vlgmr.msra.gmra.mxu1 %v131_v9 }
  0x62   :  { %657 = vmatpush.bf16.msrb.mxu2 %v1000_v62 }
  0x63   :  { %670 = vmatpush.bf16.msrb.mxu3 %v1008_v60 }
  0xde   :  { %v243_v47 = vpop.f32.mrf.mxu0  ;;  %v256_v48 = vpop.f32.mrf.mxu1 }
  0xdf   :  { %v244_v49 = vadd.f32 %v243_v47, %v150_v45  ;;  %v257_v50 = vadd.f32 %v256_v48, %v151_v46 }
  0xe1   :  { %v260_v51 = vmax.f32 %v244_v49, 0.0  ;;  %v261_v52 = vmax.f32 %v257_v50, 0.0 }
  0xe3   :  { %v262_v53 = vpack.c.bf16 %v260_v51, %v260_v51  ;;  %v263_v54 = vpack.c.bf16 %v261_v52, %v261_v52 }
  0xe5   :  { %470 = vmatmul.bf16.vlgmr.msra.gmra.mxu2 %v262_v53  ;;  %483 = vmatmul.bf16.vlgmr.msra.gmra.mxu3 %v263_v54 }
  0xe6   :  { %496 = vmatmul.bf16.vlgmr.msrb.gmra.mxu0 %v262_v53  ;;  %509 = vmatmul.bf16.vlgmr.msrb.gmra.mxu1 %v263_v54  ;;  %v245_v55 = vpop.f32.mrf.mxu0  ;;  %v258_v56 = vpop.f32.mrf.mxu1 }
 0x163   :  { %v497_v1 = vpop.f32.mrf.mxu0  ;;  %v510_v2 = vpop.f32.mrf.mxu1 }
 0x164   :  { %v498_v3 = vadd.f32 %v497_v1, %v299_v0 }
 0x166   :  { %v511_v5 = vadd.f32 %v510_v2, %v498_v3 }
 0x168   :  { %v515_v6 = vmax.f32 %v511_v5, 0.0  ;;  %v471_v7 = vpop.f32.mrf.mxu2  ;;  %v484_v8 = vpop.f32.mrf.mxu3 }
 0x169   :  { %v472_v9 = vadd.f32 %v471_v7, %v298_v4 }
 0x16a   :  { %v517_v10 = vpack.c.bf16 %v515_v6, %v515_v6 }
 0x16b   :  { %v485_v11 = vadd.f32 %v484_v8, %v472_v9  ;;  %v499_v12 = vpop.f32.mrf.mxu0  ;;  %v512_v13 = vpop.f32.mrf.mxu1 }
 0x16c   :  { %671 = vmatmul.bf16.vlgmr.msrb.gmra.mxu3 %v517_v10 }
 0x16d   :  { %v514_v14 = vmax.f32 %v485_v11, 0.0 }
 0x16f   :  { %v516_v15 = vpack.c.bf16 %v514_v14, %v514_v14 }
 0x170   :  { %v473_v16 = vpop.f32.mrf.mxu2  ;;  %v486_v17 = vpop.f32.mrf.mxu3 }
 0x171   :  { %658 = vmatmul.bf16.vlgmr.msrb.gmra.mxu2 %v516_v15 }
 0x1ef   :  { %v672_v18 = vpop.f32.mrf.mxu3 }
 0x1f4   :  { %v659_v20 = vpop.f32.mrf.mxu2 }
 0x1f5   :  { %v660_v21 = vadd.f32 %v1028_v19, %v659_v20 }
 0x1f7   :  { %v673_v22 = vadd.f32 %v672_v18, %v660_v21  ;;  %v674_v23 = vpop.f32.mrf.mxu3 }
 0x1f9   :  { %676 = vst [vmem:[#allocation12] sm:$0xff] %v673_v22 }
 0x1fa   :  { %687 = dma.vmem_to_hbm [thread:$0]  %s683_s20, 128, %s685_s22, [#allocation5]  }
 0x1fc   :  { %v661_v24 = vpop.f32.mrf.mxu2 }
 0x1fd   :  { %1181 = dma.done.wait [#allocation5], 128  }
 0x1fe   :  { %1182 = vsyncadd [#allocation5], 4294967168 }
 0x1ff   :  { %692 = vsyncpa [#allocation4], 1 }
 0x200   :  { %693 = vsyncpa [#allocation7], 1 }
 0x201   :  { %694 = vsyncpa [#allocation10], 1 }
 0x202   :  { %695 = vsyncpa [#allocation5], 1 }

</bundles_post_ra>
